<compile_context>
chip_gen: v6e
topology: v6e:2x2x1
jax: 0.10.0
libtpu: 0.0.40
codegen_flags: <defaults>
</compile_context>

<pallas_src>
import functools

import jax
import jax.numpy as jnp
from jax import lax
from jax.experimental import pallas as pl
from jax.experimental.pallas import tpu as pltpu

LANES = 128   # TPU lane width: channel dims padded to multiples of this.


def _round_up(x: int, m: int) -> int:
    return (x + m - 1) // m * m


def _vmem_budget_bytes() -> int:
    """Per-generation scoped-VMEM budget. v4/v5e/v6e have 128 MiB of VMEM per
    TensorCore; the conservative fallback fits v7x's 64 MiB."""
    try:
        kind = jax.devices()[0].device_kind.lower()
    except Exception:
        kind = ""
    if any(tag in kind for tag in ("v4", "v5", "v6")):
        return 100 * 1024 * 1024
    return 48 * 1024 * 1024


# ----------------------------- Pallas kernels -----------------------------


def _mlp_kernel(x_ref, w1_ref, b1_ref, w2_ref, b2_ref, w3_ref, b3_ref, o_ref):
    # Linear -> ReLU -> (Dropout=id) -> Linear -> ReLU -> (Dropout=id) -> Linear
    # bf16 matmul operands on the MXU, f32 accumulation/elementwise; h emitted in
    # bf16 (halves HBM traffic and the propagation kernel's resident footprint).
    h = jnp.dot(x_ref[...], w1_ref[...], preferred_element_type=jnp.float32) + b1_ref[...]
    h = jnp.maximum(h, 0.0)
    h = jnp.dot(h.astype(jnp.bfloat16), w2_ref[...],
                preferred_element_type=jnp.float32) + b2_ref[...]
    h = jnp.maximum(h, 0.0)
    h = jnp.dot(h.astype(jnp.bfloat16), w3_ref[...],
                preferred_element_type=jnp.float32) + b3_ref[...]
    o_ref[...] = h.astype(o_ref.dtype)


def _prop_kernel(a_ref, h_ref, o_ref, z_ref, acc_ref, *, alpha, tm, tk, n_pad):
    """All K APPNP iterations fused into one grid: grid = (K, rows, cols).

      z_0 = h ;  z_{k+1}[i] = (1-alpha) * sum_j A[i,j] @ z_k[j] + alpha * h[i]

    * A streams in (tm, tk) bf16 blocks; when tm == tk == n_pad its block index is
      constant, so it is DMA'd once and stays VMEM-resident across all K iterations.
    * h is VMEM-resident (bf16, constant block index).
    * z ping-pongs between the two halves of a bf16 VMEM scratch: half (k % 2) holds
      z_k, the other half receives z_{k+1} -> z never touches HBM.
    * The output block index is constant, so the f32 result is written back once.
    """
    k = pl.program_id(0)
    i = pl.program_id(1)
    j = pl.program_id(2)
    nk = pl.num_programs(0)
    nj = pl.num_programs(2)

    read_base = (k % 2) * n_pad           # scratch half holding z_k
    write_base = n_pad - read_base        # scratch half receiving z_{k+1}

    @pl.when((k == 0) & (i == 0) & (j == 0))
    def _init():                          # z_0 = h
        z_ref[pl.ds(0, n_pad), :] = h_ref[...]

    @pl.when(j == 0)
    def _zero():
        acc_ref[...] = jnp.zeros_like(acc_ref)

    z_cols = z_ref[pl.ds(pl.multiple_of(read_base + j * tk, tk), tk), :]
    acc_ref[...] += jnp.dot(a_ref[...], z_cols, preferred_element_type=jnp.float32)

    @pl.when(j == nj - 1)
    def _finish():
        row0 = pl.multiple_of(i * tm, tm)
        h_rows = h_ref[pl.ds(row0, tm), :].astype(jnp.float32)
        z_new = (1.0 - alpha) * acc_ref[...] + alpha * h_rows
        z_ref[pl.ds(pl.multiple_of(write_base + row0, tm), tm), :] = (
            z_new.astype(z_ref.dtype))

        @pl.when(k == nk - 1)
        def _():
            o_ref[pl.ds(row0, tm), :] = z_new.astype(o_ref.dtype)


# ----------------------------- tiling / padding helpers --------------------


def _prop_vmem_bytes(n_pad: int, cp: int, tm: int, tk: int) -> int:
    a_buf = 2 * tm * tk * 2            # A block, double-buffered, bf16
    h_buf = 2 * n_pad * cp * 2         # resident h (bf16), 2 buffers budgeted
    o_buf = 2 * n_pad * cp * 4         # resident f32 output, 2 buffers budgeted
    z_buf = 2 * n_pad * cp * 2         # ping-pong z scratch (bf16)
    acc = tm * cp * 4                  # f32 row-tile accumulator
    return a_buf + h_buf + o_buf + z_buf + acc


def _choose_prop_tiling(n: int, cp: int, vmem_budget: int, tile_cap=None):
    """Pick (n_pad, tm, tk). Prefer a single (n_pad, n_pad) A tile (A VMEM-resident
    across all K iterations); otherwise stream A in the largest blocks that fit."""
    n128 = _round_up(max(n, 1), LANES)
    cap = n128 if tile_cap is None else max(LANES, _round_up(tile_cap, LANES))
    if cap >= n128 and _prop_vmem_bytes(n128, cp, n128, n128) <= vmem_budget:
        return n128, n128, n128
    tm = min(cap, 512)
    n_pad = _round_up(n, tm)
    tk = tm
    for cand in (2048, 1024):          # widen the contraction tile if it divides & fits
        if cand <= cap and n_pad % cand == 0 and \
                _prop_vmem_bytes(n_pad, cp, tm, cand) <= vmem_budget:
            tk = cand
            break
    # TODO(synk): graphs so large that the resident h/z/output footprint alone exceeds
    # the VMEM budget (n_pad >~ 20k on v7x) would need a z-streaming fallback; a dense
    # N^2 adjacency is impractical well before that point.
    return n_pad, tm, tk


def _pad2d(a, rows: int, cols: int, dtype):
    a = a.astype(dtype)
    return jnp.pad(a, ((0, rows - a.shape[0]), (0, cols - a.shape[1])))


# ----------------------------- wrappers ------------------------------------


def mlp_forward(x_pad, params_pad, *, vmem_limit):
    """Tiled, row-parallel fused MLP producing a lane-dense (128-wide) bf16 h."""
    (w1, b1), (w2, b2), (w3, b3) = params_pad
    n_pad, cin = x_pad.shape
    ch = w1.shape[1]
    cout = w3.shape[1]
    tm = next(t for t in (512, 256, 128) if n_pad % t == 0)
    flops = 2 * n_pad * (cin * ch + ch * ch + ch * cout)
    bytes_acc = (n_pad * cin * 2 + (cin * ch + ch * ch + ch * cout) * 2
                 + (2 * ch + cout) * 4 + n_pad * cout * 2)
    return pl.pallas_call(
        _mlp_kernel,
        out_shape=jax.ShapeDtypeStruct((n_pad, cout), jnp.bfloat16),
        grid_spec=pltpu.PrefetchScalarGridSpec(
            num_scalar_prefetch=0,
            grid=(n_pad // tm,),
            in_specs=[
                pl.BlockSpec((tm, cin), lambda i: (i, 0)),
                pl.BlockSpec((cin, ch), lambda i: (0, 0)),
                pl.BlockSpec((1, ch), lambda i: (0, 0)),
                pl.BlockSpec((ch, ch), lambda i: (0, 0)),
                pl.BlockSpec((1, ch), lambda i: (0, 0)),
                pl.BlockSpec((ch, cout), lambda i: (0, 0)),
                pl.BlockSpec((1, cout), lambda i: (0, 0)),
            ],
            out_specs=pl.BlockSpec((tm, cout), lambda i: (i, 0)),
        ),
        compiler_params=pltpu.CompilerParams(
            dimension_semantics=("parallel",),
            vmem_limit_bytes=vmem_limit,
        ),
        cost_estimate=pl.CostEstimate(flops=flops, transcendentals=0,
                                      bytes_accessed=bytes_acc),
    )(x_pad, w1, b1, w2, b2, w3, b3)


def appnp_propagate(a_pad, h_pad, *, iterations, alpha, tm, tk, vmem_limit):
    """z = h; repeat K: z = (1-alpha) * A_hat @ z + alpha * h (one fused pallas_call)."""
    n_pad, cp = h_pad.shape
    assert n_pad % tm == 0 and n_pad % tk == 0
    resident_a = (tm == n_pad and tk == n_pad)
    a_reads = 1 if resident_a else iterations
    flops = 2 * iterations * n_pad * n_pad * cp
    bytes_acc = a_reads * n_pad * n_pad * 2 + n_pad * cp * 2 + n_pad * cp * 4
    return pl.pallas_call(
        functools.partial(_prop_kernel, alpha=alpha, tm=tm, tk=tk, n_pad=n_pad),
        out_shape=jax.ShapeDtypeStruct((n_pad, cp), jnp.float32),
        grid_spec=pltpu.PrefetchScalarGridSpec(
            num_scalar_prefetch=0,
            grid=(iterations, n_pad // tm, n_pad // tk),
            in_specs=[
                pl.BlockSpec((tm, tk), lambda k, i, j: (i, j)),      # A_hat block
                pl.BlockSpec((n_pad, cp), lambda k, i, j: (0, 0)),   # h, VMEM-resident
            ],
            out_specs=pl.BlockSpec((n_pad, cp), lambda k, i, j: (0, 0)),  # resident out
            scratch_shapes=[
                pltpu.VMEM((2 * n_pad, cp), jnp.bfloat16),   # z ping-pong (never hits HBM)
                pltpu.VMEM((tm, cp), jnp.float32),           # f32 row-tile accumulator
            ],
        ),
        compiler_params=pltpu.CompilerParams(
            # z/acc state is carried across every grid axis -> all sequential. The
            # kernel is HBM-bandwidth-bound, so megacore sharding would add no bandwidth.
            dimension_semantics=("arbitrary", "arbitrary", "arbitrary"),
            vmem_limit_bytes=vmem_limit,
        ),
        cost_estimate=pl.CostEstimate(flops=flops, transcendentals=0,
                                      bytes_accessed=bytes_acc),
    )(a_pad, h_pad)


def appnp_forward(x, edge_index, params, *, iterations, alpha, tile_cap=None):
    """Full APPNP forward: h = MLP(x); z = PPR_K(h). Returns [N, out_channels] f32."""
    (w1, b1), (w2, b2), (w3, b3) = params
    n, in_c = x.shape
    hid_c = w1.shape[1]
    out_c = w3.shape[1]

    cin = _round_up(in_c, LANES)
    chid = _round_up(hid_c, LANES)
    cout = _round_up(out_c, LANES)

    vmem_budget = _vmem_budget_bytes()
    n_pad, tm, tk = _choose_prop_tiling(n, cout, vmem_budget, tile_cap)

    # Zero-padding is exact: padded input columns hit zero weight rows, padded output
    # columns have zero weights/bias, and padded adjacency rows/cols are zero, so
    # padded node rows never leak into the first n rows that we slice out below.
    x_pad = _pad2d(x, n_pad, cin, jnp.bfloat16)
    params_pad = (
        (_pad2d(w1, cin, chid, jnp.bfloat16), _pad2d(b1, 1, chid, jnp.float32)),
        (_pad2d(w2, chid, chid, jnp.bfloat16), _pad2d(b2, 1, chid, jnp.float32)),
        (_pad2d(w3, chid, cout, jnp.bfloat16), _pad2d(b3, 1, cout, jnp.float32)),
    )
    # A_hat built directly in the padded bf16 layout (single normalize+cast pass).
    a_pad = gcn_norm_dense(edge_index, n, n_pad=n_pad, dtype=jnp.bfloat16)

    h_pad = mlp_forward(x_pad, params_pad, vmem_limit=vmem_budget)
    if iterations <= 0:
        return h_pad[:n, :out_c].astype(jnp.float32)
    z_pad = appnp_propagate(a_pad, h_pad, iterations=iterations, alpha=alpha,
                            tm=tm, tk=tk, vmem_limit=vmem_budget)
    return z_pad[:n, :out_c]


# ----------------------------- glue (plain JAX) ----------------------------


def gcn_norm_dense(edge_index, num_nodes, *, n_pad=None, dtype=jnp.float32):
    """Dense symmetrically-normalized adjacency with self-loops (gcn_norm),
    optionally emitted zero-padded to (n_pad, n_pad) and cast in the same pass."""
    if n_pad is None:
        n_pad = num_nodes
    src, dst = edge_index
    a = jnp.zeros((n_pad, n_pad), jnp.float32)
    a = a.at[dst, src].set(1.0)                 # A_hat[i, j]: message from source j to target i
    diag = jnp.arange(num_nodes)
    a = a.at[diag, diag].add(1.0)               # add self-loops (real nodes only)
    deg = jnp.sum(a, axis=1)
    d_inv_sqrt = jnp.where(deg > 0, lax.rsqrt(deg), 0.0)
    return (d_inv_sqrt[:, None] * a * d_inv_sqrt[None, :]).astype(dtype)


def init_params(key, in_channels, hidden_channels, out_channels):
    """Deterministic Kaiming-uniform-like init for the 3 Linear layers."""
    def linear(key, fan_in, fan_out):
        kw, kb = jax.random.split(key)
        bound = 1.0 / jnp.sqrt(fan_in)
        w = jax.random.uniform(kw, (fan_in, fan_out), jnp.float32, -bound, bound)
        b = jax.random.uniform(kb, (1, fan_out), jnp.float32, -bound, bound)
        return w, b

    k1, k2, k3 = jax.random.split(key, 3)
    return (
        linear(k1, in_channels, hidden_channels),
        linear(k2, hidden_channels, hidden_channels),
        linear(k3, hidden_channels, out_channels),
    )


def appnp_reference(x, adj_hat, params, *, iterations, alpha):
    """Pure-JAX f32 reference for correctness checking."""
    (w1, b1), (w2, b2), (w3, b3) = params
    h = jnp.maximum(x @ w1 + b1, 0.0)
    h = jnp.maximum(h @ w2 + b2, 0.0)
    h = h @ w3 + b3
    z = h
    for _ in range(iterations):
        z = (1.0 - alpha) * (adj_hat @ z) + alpha * h
    return z


# ----------------------------- demo ----------------------------------------

if __name__ == "__main__":
    # Module config: APPNP(iterations=10, alpha=0.1, in=16, hidden=32,
    #                      num_layers=2, out_channels=8)
    IN_C, HID_C, OUT_C = 16, 32, 8
    ITERATIONS, ALPHA = 10, 0.1

    key = jax.random.PRNGKey(0)
    kx1, kx2, kp = jax.random.split(key, 3)
    params = init_params(kp, IN_C, HID_C, OUT_C)

    def ring_graph(num_nodes):
        idx = jnp.arange(num_nodes)
        nxt = (idx + 1) % num_nodes
        src = jnp.concatenate([idx, nxt])
        dst = jnp.concatenate([nxt, idx])
        return jnp.stack([src, dst])      # [2, E]

    # --- small graph: A_hat held VMEM-resident across all K iterations (grid=(K,1,1)).
    N1 = 64
    x1 = jax.random.normal(kx1, (N1, IN_C), jnp.float32)
    e1 = ring_graph(N1)
    fwd_resident = jax.jit(functools.partial(appnp_forward,
                                             iterations=ITERATIONS, alpha=ALPHA))
    out1 = jax.block_until_ready(fwd_resident(x1, e1, params))
    ref1 = appnp_reference(x1, gcn_norm_dense(e1, N1), params,
                           iterations=ITERATIONS, alpha=ALPHA)
    assert out1.shape == (N1, OUT_C)
    assert bool(jnp.all(jnp.isfinite(out1)))
    err1 = float(jnp.max(jnp.abs(out1 - ref1) / (1.0 + jnp.abs(ref1))))
    assert err1 < 0.1, f"resident path mismatch: {err1}"

    # --- larger graph with a small tile cap: exercises the streamed (K, rows, cols)
    #     grid with the ping-pong z scratch (same kernel, multi-tile A).
    N2 = 300
    x2 = jax.random.normal(kx2, (N2, IN_C), jnp.float32)
    e2 = ring_graph(N2)
    fwd_tiled = jax.jit(functools.partial(appnp_forward, iterations=ITERATIONS,
                                          alpha=ALPHA, tile_cap=128))
    out2 = jax.block_until_ready(fwd_tiled(x2, e2, params))
    ref2 = appnp_reference(x2, gcn_norm_dense(e2, N2), params,
                           iterations=ITERATIONS, alpha=ALPHA)
    assert out2.shape == (N2, OUT_C)
    assert bool(jnp.all(jnp.isfinite(out2)))
    err2 = float(jnp.max(jnp.abs(out2 - ref2) / (1.0 + jnp.abs(ref2))))
    assert err2 < 0.1, f"tiled path mismatch: {err2}"

    print("KERNEL_OK")
</pallas_src>

<mosaic_0001>
module attributes {stable_mosaic.version = 11 : i64} {
  func.func private @main(%arg0: i32) attributes {dimension_semantics = [#tpu.dimension_semantics<core_parallel>], iteration_bounds = array<i64: 2>, tpu.core_type = #tpu.core_type<sc_scalar_subcore>, window_params = []} {
    return
  }
}

module attributes {stable_mosaic.version = 11 : i64} {
  func.func private @main(%arg0: i32) attributes {dimension_semantics = [#tpu.dimension_semantics<core_parallel>], iteration_bounds = array<i64: 2>, tpu.core_type = #tpu.core_type<sc_scalar_subcore>, window_params = []} {
    return
  }
}

module attributes {stable_mosaic.version = 11 : i64} {
  func.func @_mlp_kernel(%arg0: i32, %arg1: memref<128x128xbf16, #tpu.memory_space<vmem>>, %arg2: memref<128x128xbf16, #tpu.memory_space<vmem>>, %arg3: memref<1x128xf32, #tpu.memory_space<vmem>>, %arg4: memref<128x128xbf16, #tpu.memory_space<vmem>>, %arg5: memref<1x128xf32, #tpu.memory_space<vmem>>, %arg6: memref<128x128xbf16, #tpu.memory_space<vmem>>, %arg7: memref<1x128xf32, #tpu.memory_space<vmem>>, %arg8: memref<128x128xbf16, #tpu.memory_space<vmem>>) attributes {dimension_semantics = [#tpu.dimension_semantics<parallel>], iteration_bounds = array<i64: 1>, scalar_prefetch = 0 : i64, scratch_operands = 0 : i64, tpu.core_type = #tpu.core_type<tc>, window_params = [{transform_indices = @transform_0, window_bounds = array<i64: 128, 128>}, {pipeline_mode = #tpu.pipeline_mode<synchronous>, transform_indices = @transform_1, window_bounds = array<i64: 128, 128>}, {pipeline_mode = #tpu.pipeline_mode<synchronous>, transform_indices = @transform_2, window_bounds = array<i64: 1, 128>}, {pipeline_mode = #tpu.pipeline_mode<synchronous>, transform_indices = @transform_3, window_bounds = array<i64: 128, 128>}, {pipeline_mode = #tpu.pipeline_mode<synchronous>, transform_indices = @transform_4, window_bounds = array<i64: 1, 128>}, {pipeline_mode = #tpu.pipeline_mode<synchronous>, transform_indices = @transform_5, window_bounds = array<i64: 128, 128>}, {pipeline_mode = #tpu.pipeline_mode<synchronous>, transform_indices = @transform_6, window_bounds = array<i64: 1, 128>}, {transform_indices = @transform_7, window_bounds = array<i64: 128, 128>}]} {
    %c0 = arith.constant 0 : index
    %c0_0 = arith.constant 0 : index
    %0 = vector.load %arg1[%c0, %c0_0] : memref<128x128xbf16, #tpu.memory_space<vmem>>, vector<128x128xbf16>
    %c0_1 = arith.constant 0 : index
    %c0_2 = arith.constant 0 : index
    %1 = vector.load %arg2[%c0_1, %c0_2] : memref<128x128xbf16, #tpu.memory_space<vmem>>, vector<128x128xbf16>
    %cst = arith.constant dense<0.000000e+00> : vector<128x128xf32>
    %2 = tpu.matmul %0, %1, %cst {dimension_numbers = #tpu.dot_dimension_numbers<[1], [0], [0], [1], [0, 0, 1, 1], [], []>} : vector<128x128xbf16>, vector<128x128xbf16>, vector<128x128xf32> -> vector<128x128xf32>
    %c0_3 = arith.constant 0 : index
    %c0_4 = arith.constant 0 : index
    %3 = vector.load %arg3[%c0_3, %c0_4] : memref<1x128xf32, #tpu.memory_space<vmem>>, vector<1x128xf32>
    %4 = vector.broadcast %3 : vector<1x128xf32> to vector<128x128xf32>
    %5 = arith.addf %2, %4 : vector<128x128xf32>
    %cst_5 = arith.constant 0.000000e+00 : f32
    %6 = vector.broadcast %cst_5 : f32 to vector<128x128xf32>
    %7 = arith.maximumf %5, %6 : vector<128x128xf32>
    %8 = arith.truncf %7 : vector<128x128xf32> to vector<128x128xbf16>
    %c0_6 = arith.constant 0 : index
    %c0_7 = arith.constant 0 : index
    %9 = vector.load %arg4[%c0_6, %c0_7] : memref<128x128xbf16, #tpu.memory_space<vmem>>, vector<128x128xbf16>
    %cst_8 = arith.constant dense<0.000000e+00> : vector<128x128xf32>
    %10 = tpu.matmul %8, %9, %cst_8 {dimension_numbers = #tpu.dot_dimension_numbers<[1], [0], [0], [1], [0, 0, 1, 1], [], []>} : vector<128x128xbf16>, vector<128x128xbf16>, vector<128x128xf32> -> vector<128x128xf32>
    %c0_9 = arith.constant 0 : index
    %c0_10 = arith.constant 0 : index
    %11 = vector.load %arg5[%c0_9, %c0_10] : memref<1x128xf32, #tpu.memory_space<vmem>>, vector<1x128xf32>
    %12 = vector.broadcast %11 : vector<1x128xf32> to vector<128x128xf32>
    %13 = arith.addf %10, %12 : vector<128x128xf32>
    %cst_11 = arith.constant 0.000000e+00 : f32
    %14 = vector.broadcast %cst_11 : f32 to vector<128x128xf32>
    %15 = arith.maximumf %13, %14 : vector<128x128xf32>
    %16 = arith.truncf %15 : vector<128x128xf32> to vector<128x128xbf16>
    %c0_12 = arith.constant 0 : index
    %c0_13 = arith.constant 0 : index
    %17 = vector.load %arg6[%c0_12, %c0_13] : memref<128x128xbf16, #tpu.memory_space<vmem>>, vector<128x128xbf16>
    %cst_14 = arith.constant dense<0.000000e+00> : vector<128x128xf32>
    %18 = tpu.matmul %16, %17, %cst_14 {dimension_numbers = #tpu.dot_dimension_numbers<[1], [0], [0], [1], [0, 0, 1, 1], [], []>} : vector<128x128xbf16>, vector<128x128xbf16>, vector<128x128xf32> -> vector<128x128xf32>
    %c0_15 = arith.constant 0 : index
    %c0_16 = arith.constant 0 : index
    %19 = vector.load %arg7[%c0_15, %c0_16] : memref<1x128xf32, #tpu.memory_space<vmem>>, vector<1x128xf32>
    %20 = vector.broadcast %19 : vector<1x128xf32> to vector<128x128xf32>
    %21 = arith.addf %18, %20 : vector<128x128xf32>
    %22 = arith.truncf %21 : vector<128x128xf32> to vector<128x128xbf16>
    %c0_17 = arith.constant 0 : index
    %c0_18 = arith.constant 0 : index
    %23 = vector.load %arg8[%c0_17, %c0_18] : memref<128x128xbf16, #tpu.memory_space<vmem>>, vector<128x128xbf16>
    tpu.vector_store %arg8[%c0_17, %c0_18], %22 {strides = array<i32>} : memref<128x128xbf16, #tpu.memory_space<vmem>>, vector<128x128xbf16>,
    return
  }
  func.func @transform_0(%arg0: i32) -> (i32, i32) {
    %c0_i32 = arith.constant 0 : i32
    %c0_i32_0 = arith.constant 0 : i32
    return %arg0, %c0_i32 : i32, i32
  }
  func.func @transform_1(%arg0: i32) -> (i32, i32) {
    %c0_i32 = arith.constant 0 : i32
    %c0_i32_0 = arith.constant 0 : i32
    %c0_i32_1 = arith.constant 0 : i32
    return %c0_i32, %c0_i32_0 : i32, i32
  }
  func.func @transform_2(%arg0: i32) -> (i32, i32) {
    %c0_i32 = arith.constant 0 : i32
    %c0_i32_0 = arith.constant 0 : i32
    %c0_i32_1 = arith.constant 0 : i32
    return %c0_i32, %c0_i32_0 : i32, i32
  }
  func.func @transform_3(%arg0: i32) -> (i32, i32) {
    %c0_i32 = arith.constant 0 : i32
    %c0_i32_0 = arith.constant 0 : i32
    %c0_i32_1 = arith.constant 0 : i32
    return %c0_i32, %c0_i32_0 : i32, i32
  }
  func.func @transform_4(%arg0: i32) -> (i32, i32) {
    %c0_i32 = arith.constant 0 : i32
    %c0_i32_0 = arith.constant 0 : i32
    %c0_i32_1 = arith.constant 0 : i32
    return %c0_i32, %c0_i32_0 : i32, i32
  }
  func.func @transform_5(%arg0: i32) -> (i32, i32) {
    %c0_i32 = arith.constant 0 : i32
    %c0_i32_0 = arith.constant 0 : i32
    %c0_i32_1 = arith.constant 0 : i32
    return %c0_i32, %c0_i32_0 : i32, i32
  }
  func.func @transform_6(%arg0: i32) -> (i32, i32) {
    %c0_i32 = arith.constant 0 : i32
    %c0_i32_0 = arith.constant 0 : i32
    %c0_i32_1 = arith.constant 0 : i32
    return %c0_i32, %c0_i32_0 : i32, i32
  }
  func.func @transform_7(%arg0: i32) -> (i32, i32) {
    %c0_i32 = arith.constant 0 : i32
    %c0_i32_0 = arith.constant 0 : i32
    return %arg0, %c0_i32 : i32, i32
  }
}

module attributes {stable_mosaic.version = 11 : i64} {
  func.func @_prop_kernel(%arg0: i32, %arg1: i32, %arg2: i32, %arg3: memref<128x128xbf16, #tpu.memory_space<vmem>>, %arg4: memref<128x128xbf16, #tpu.memory_space<vmem>>, %arg5: memref<128x128xf32, #tpu.memory_space<vmem>>, %arg6: memref<256x128xbf16, #tpu.memory_space<vmem>>, %arg7: memref<128x128xf32, #tpu.memory_space<vmem>>) attributes {dimension_semantics = [#tpu.dimension_semantics<arbitrary>, #tpu.dimension_semantics<arbitrary>, #tpu.dimension_semantics<arbitrary>], iteration_bounds = array<i64: 10, 1, 1>, scalar_prefetch = 0 : i64, scratch_operands = 2 : i64, tpu.core_type = #tpu.core_type<tc>, window_params = [{transform_indices = @transform_0, window_bounds = array<i64: 128, 128>}, {pipeline_mode = #tpu.pipeline_mode<synchronous>, transform_indices = @transform_1, window_bounds = array<i64: 128, 128>}, {pipeline_mode = #tpu.pipeline_mode<synchronous>, transform_indices = @transform_2, window_bounds = array<i64: 128, 128>}]} {
    %c2_i32 = arith.constant 2 : i32
    %c0_i32 = arith.constant 0 : i32
    %0 = arith.cmpi eq, %c2_i32, %c0_i32 : i32
    %c1_i32 = arith.constant 1 : i32
    %1 = arith.select %0, %c1_i32, %c2_i32 : i32
    %2 = arith.remsi %arg0, %1 : i32
    %c0_i32_0 = arith.constant 0 : i32
    %3 = arith.cmpi ne, %2, %c0_i32_0 : i32
    %c0_i32_1 = arith.constant 0 : i32
    %4 = arith.cmpi slt, %2, %c0_i32_1 : i32
    %c0_i32_2 = arith.constant 0 : i32
    %5 = arith.cmpi slt, %1, %c0_i32_2 : i32
    %6 = arith.xori %4, %5 : i1
    %7 = arith.andi %6, %3 : i1
    %8 = arith.addi %2, %1 : i32
    %9 = arith.select %7, %8, %2 : i32
    %c128_i32 = arith.constant 128 : i32
    %10 = arith.muli %9, %c128_i32 : i32
    %c128_i32_3 = arith.constant 128 : i32
    %11 = arith.subi %c128_i32_3, %10 : i32
    %c0_i32_4 = arith.constant 0 : i32
    %12 = arith.cmpi eq, %arg0, %c0_i32_4 : i32
    %c0_i32_5 = arith.constant 0 : i32
    %13 = arith.cmpi eq, %arg1, %c0_i32_5 : i32
    %14 = arith.andi %12, %13 : i1
    %c0_i32_6 = arith.constant 0 : i32
    %15 = arith.cmpi eq, %arg2, %c0_i32_6 : i32
    %16 = arith.andi %14, %15 : i1
    %17 = arith.extui %16 : i1 to i32
    %c0_i32_7 = arith.constant 0 : i32
    %18 = arith.cmpi ne, %17, %c0_i32_7 : i32
    scf.if %18 {
      %c0_19 = arith.constant 0 : index
      %c0_20 = arith.constant 0 : index
      %35 = vector.load %arg4[%c0_19, %c0_20] : memref<128x128xbf16, #tpu.memory_space<vmem>>, vector<128x128xbf16>
      %c0_21 = arith.constant 0 : index
      %c0_22 = arith.constant 0 : index
      %36 = vector.load %arg6[%c0_21, %c0_22] : memref<256x128xbf16, #tpu.memory_space<vmem>>, vector<128x128xbf16>
      tpu.vector_store %arg6[%c0_21, %c0_22], %35 {strides = array<i32>} : memref<256x128xbf16, #tpu.memory_space<vmem>>, vector<128x128xbf16>,
    } else {
    }
    %c0_i32_8 = arith.constant 0 : i32
    %19 = arith.cmpi eq, %arg2, %c0_i32_8 : i32
    %20 = arith.extui %19 : i1 to i32
    %c0_i32_9 = arith.constant 0 : i32
    %21 = arith.cmpi ne, %20, %c0_i32_9 : i32
    scf.if %21 {
      %cst_19 = arith.constant 0.000000e+00 : f32
      %35 = vector.broadcast %cst_19 : f32 to vector<128x128xf32>
      %c0_20 = arith.constant 0 : index
      %c0_21 = arith.constant 0 : index
      %36 = vector.load %arg7[%c0_20, %c0_21] : memref<128x128xf32, #tpu.memory_space<vmem>>, vector<128x128xf32>
      tpu.vector_store %arg7[%c0_20, %c0_21], %35 {strides = array<i32>} : memref<128x128xf32, #tpu.memory_space<vmem>>, vector<128x128xf32>,
    } else {
    }
    %c128_i32_10 = arith.constant 128 : i32
    %22 = arith.muli %arg2, %c128_i32_10 : i32
    %23 = arith.addi %10, %22 : i32
    %24 = tpu.assume_multiple %23, 128 : i32
    %25 = arith.index_cast %24 : i32 to index
    %c0 = arith.constant 0 : index
    %26 = vector.load %arg6[%25, %c0] : memref<256x128xbf16, #tpu.memory_space<vmem>>, vector<128x128xbf16>
    %c0_11 = arith.constant 0 : index
    %c0_12 = arith.constant 0 : index
    %27 = vector.load %arg7[%c0_11, %c0_12] : memref<128x128xf32, #tpu.memory_space<vmem>>, vector<128x128xf32>
    %c0_13 = arith.constant 0 : index
    %c0_14 = arith.constant 0 : index
    %28 = vector.load %arg3[%c0_13, %c0_14] : memref<128x128xbf16, #tpu.memory_space<vmem>>, vector<128x128xbf16>
    %cst = arith.constant dense<0.000000e+00> : vector<128x128xf32>
    %29 = tpu.matmul %28, %26, %cst {dimension_numbers = #tpu.dot_dimension_numbers<[1], [0], [0], [1], [0, 0, 1, 1], [], []>} : vector<128x128xbf16>, vector<128x128xbf16>, vector<128x128xf32> -> vector<128x128xf32>
    %30 = arith.addf %27, %29 : vector<128x128xf32>
    %c0_15 = arith.constant 0 : index
    %c0_16 = arith.constant 0 : index
    %31 = vector.load %arg7[%c0_15, %c0_16] : memref<128x128xf32, #tpu.memory_space<vmem>>, vector<128x128xf32>
    tpu.vector_store %arg7[%c0_15, %c0_16], %30 {strides = array<i32>} : memref<128x128xf32, #tpu.memory_space<vmem>>, vector<128x128xf32>,
    %c0_i32_17 = arith.constant 0 : i32
    %32 = arith.cmpi eq, %arg2, %c0_i32_17 : i32
    %33 = arith.extui %32 : i1 to i32
    %c0_i32_18 = arith.constant 0 : i32
    %34 = arith.cmpi ne, %33, %c0_i32_18 : i32
    scf.if %34 {
      %c128_i32_19 = arith.constant 128 : i32
      %35 = arith.muli %arg1, %c128_i32_19 : i32
      %36 = tpu.assume_multiple %35, 128 : i32
      %37 = arith.index_cast %36 : i32 to index
      %c0_20 = arith.constant 0 : index
      %38 = vector.load %arg4[%37, %c0_20] : memref<128x128xbf16, #tpu.memory_space<vmem>>, vector<128x128xbf16>
      %39 = arith.extf %38 : vector<128x128xbf16> to vector<128x128xf32>
      %c0_21 = arith.constant 0 : index
      %c0_22 = arith.constant 0 : index
      %40 = vector.load %arg7[%c0_21, %c0_22] : memref<128x128xf32, #tpu.memory_space<vmem>>, vector<128x128xf32>
      %cst_23 = arith.constant 0.899999976 : f32
      %41 = vector.broadcast %cst_23 : f32 to vector<128x128xf32>
      %42 = arith.mulf %41, %40 : vector<128x128xf32>
      %cst_24 = arith.constant 1.000000e-01 : f32
      %43 = vector.broadcast %cst_24 : f32 to vector<128x128xf32>
      %44 = arith.mulf %43, %39 : vector<128x128xf32>
      %45 = arith.addf %42, %44 : vector<128x128xf32>
      %46 = arith.truncf %45 : vector<128x128xf32> to vector<128x128xbf16>
      %47 = arith.addi %11, %36 : i32
      %48 = tpu.assume_multiple %47, 128 : i32
      %49 = arith.index_cast %48 : i32 to index
      %c0_25 = arith.constant 0 : index
      %50 = vector.load %arg6[%49, %c0_25] : memref<256x128xbf16, #tpu.memory_space<vmem>>, vector<128x128xbf16>
      tpu.vector_store %arg6[%49, %c0_25], %46 {strides = array<i32>} : memref<256x128xbf16, #tpu.memory_space<vmem>>, vector<128x128xbf16>,
      %c9_i32 = arith.constant 9 : i32
      %51 = arith.cmpi eq, %arg0, %c9_i32 : i32
      %52 = arith.extui %51 : i1 to i32
      %c0_i32_26 = arith.constant 0 : i32
      %53 = arith.cmpi ne, %52, %c0_i32_26 : i32
      scf.if %53 {
        %54 = arith.index_cast %36 : i32 to index
        %c0_27 = arith.constant 0 : index
        %55 = vector.load %arg5[%54, %c0_27] : memref<128x128xf32, #tpu.memory_space<vmem>>, vector<128x128xf32>
        tpu.vector_store %arg5[%54, %c0_27], %45 {strides = array<i32>} : memref<128x128xf32, #tpu.memory_space<vmem>>, vector<128x128xf32>,
      } else {
      }
    } else {
    }
    return
  }
  func.func @transform_0(%arg0: i32, %arg1: i32, %arg2: i32) -> (i32, i32) {
    %c0_i32 = arith.constant 0 : i32
    return %arg1, %arg2 : i32, i32
  }
  func.func @transform_1(%arg0: i32, %arg1: i32, %arg2: i32) -> (i32, i32) {
    %c0_i32 = arith.constant 0 : i32
    %c0_i32_0 = arith.constant 0 : i32
    %c0_i32_1 = arith.constant 0 : i32
    return %c0_i32, %c0_i32_0 : i32, i32
  }
  func.func @transform_2(%arg0: i32, %arg1: i32, %arg2: i32) -> (i32, i32) {
    %c0_i32 = arith.constant 0 : i32
    %c0_i32_0 = arith.constant 0 : i32
    %c0_i32_1 = arith.constant 0 : i32
    return %c0_i32, %c0_i32_0 : i32, i32
  }
}

</mosaic_0001>

<bundles_post_ra>
// kernel: appnp_forward.2
= control target key start
LH: loop header
LB: loop body
LE: loop exit
PB: predicated region body
PF: predicated region fallthrough
CT: control target
= control target key end

     0   :  { %s1208_s1 = inlined_call_operand.vmem [shape: bf16[128,128], index: 1, kind: input, shape index: {}]   ;;  %s1209_s0 = inlined_call_operand.vmem [shape: bf16[128,128], index: 0, kind: input, shape index: {}]   ;;  %s1210_s3 = inlined_call_operand.vmem [shape: bf16[128,128], index: 3, kind: input, shape index: {}]   ;;  %s1211_s5 = inlined_call_operand.vmem [shape: bf16[128,128], index: 5, kind: input, shape index: {}]   ;;  %s1212_s2 = inlined_call_operand.vmem [shape: f32[1,128], index: 2, kind: input, shape index: {}]   ;;  %s1213_s4 = inlined_call_operand.vmem [shape: f32[1,128], index: 4, kind: input, shape index: {}]   ;;  %s1214_s6 = inlined_call_operand.vmem [shape: f32[1,128], index: 6, kind: input, shape index: {}]   ;;  %s1215_s7 = inlined_call_operand.vmem [shape: bf16[128,128], index: 7, kind: output, shape index: {}]  }
   0x1   :  { %v1001_v0 = vld [vmem:[%s1208_s1 + $0x38] sm:$0xff]   ;;  %v1002_v1 = vld [vmem:[%s1208_s1 + $0x30] sm:$0xff]   ;;  %v1003_v2 = vld [vmem:[%s1208_s1 + $0x28] sm:$0xff]  }
   0x2   :  { %889 = vmatprep.subr.bf16.mxu0 %v1001_v0  ;;  %v1004_v3 = vld [vmem:[%s1208_s1 + $0x20] sm:$0xff]   ;;  %v1005_v5 = vld [vmem:[%s1208_s1 + $0x18] sm:$0xff]   ;;  %v1006_v6 = vld [vmem:[%s1208_s1 + $0x10] sm:$0xff]  }
   0x3   :  { %890 = vmatpush3.bf16.msra.mxu0 %v1001_v0  ;;  %v1009_v4 = vld [vmem:[%s1209_s0] sm:$0xff]   ;;  %v1017_v7 = vld [vmem:[%s1210_s3 + $0x38] sm:$0xff]   ;;  %v1018_v8 = vld [vmem:[%s1210_s3 + $0x30] sm:$0xff]  }
   0x4   :  { %891 = vmatprep.subr.bf16.mxu0 %v1002_v1  ;;  %905 = vmatprep.mubr.bf16.mxu0 %v1009_v4  ;;  %v1007_v9 = vld [vmem:[%s1208_s1 + $0x8] sm:$0xff]   ;;  %v1008_v11 = vld [vmem:[%s1208_s1] sm:$0xff]   ;;  %v1021_v13 = vld [vmem:[%s1210_s3 + $0x18] sm:$0xff]  }
   0x5   :  { %921 = vmatprep.subr.bf16.mxu1 %v1017_v7  ;;  %v1019_v10 = vld [vmem:[%s1210_s3 + $0x28] sm:$0xff]   ;;  %v1020_v12 = vld [vmem:[%s1210_s3 + $0x20] sm:$0xff]   ;;  %v1011_v15 = vld [vmem:[%s1209_s0 + $0x10] sm:$0xff]  }
   0x6   :  { %922 = vmatpush3.bf16.msra.mxu1 %v1017_v7  ;;  %v1010_v14 = vld [vmem:[%s1209_s0 + $0x8] sm:$0xff]   ;;  %v1012_v16 = vld [vmem:[%s1209_s0 + $0x18] sm:$0xff]   ;;  %v1013_v17 = vld [vmem:[%s1209_s0 + $0x20] sm:$0xff]  }
   0x7   :  { %892 = vmatpush3.bf16.msra.mxu0 %v1002_v1  ;;  %923 = vmatprep.subr.bf16.mxu1 %v1018_v8  ;;  %v1014_v18 = vld [vmem:[%s1209_s0 + $0x28] sm:$0xff]   ;;  %v1015_v19 = vld [vmem:[%s1209_s0 + $0x30] sm:$0xff]   ;;  %v1016_v20 = vld [vmem:[%s1209_s0 + $0x38] sm:$0xff]  }
   0x8   :  { %893 = vmatprep.subr.bf16.mxu0 %v1003_v2  ;;  %v1022_v21 = vld [vmem:[%s1210_s3 + $0x10] sm:$0xff]   ;;  %v1023_v22 = vld [vmem:[%s1210_s3 + $0x8] sm:$0xff]   ;;  %v1024_v23 = vld [vmem:[%s1210_s3] sm:$0xff]  }
   0x9   :  { %v1025_v24 = vld [vmem:[%s1211_s5 + $0x38] sm:$0xff]   ;;  %v1026_v25 = vld [vmem:[%s1211_s5 + $0x30] sm:$0xff]   ;;  %v1027_v26 = vld [vmem:[%s1211_s5 + $0x28] sm:$0xff]  }
   0xa   :  { %924 = vmatpush3.bf16.msra.mxu1 %v1018_v8  ;;  %v1028_v27 = vld [vmem:[%s1211_s5 + $0x20] sm:$0xff]   ;;  %v1160_v28 = vld [vmem:[%s1211_s5 + $0x18] sm:$0xff]  }
   0xb   :  { %894 = vmatpush3.bf16.msra.mxu0 %v1003_v2  ;;  %925 = vmatprep.subr.bf16.mxu1 %v1019_v10  ;;  %v727_v31 = vld [vmem:[%s1212_s2] ss:$0 sm:$0xff] }
   0xc   :  { %895 = vmatprep.subr.bf16.mxu0 %v1004_v3 }
   0xe   :  { %926 = vmatpush3.bf16.msra.mxu1 %v1019_v10 }
   0xf   :  { %896 = vmatpush3.bf16.msra.mxu0 %v1004_v3  ;;  %927 = vmatprep.subr.bf16.mxu1 %v1020_v12 }
  0x10   :  { %897 = vmatprep.subr.bf16.mxu0 %v1005_v5 }
  0x12   :  { %928 = vmatpush3.bf16.msra.mxu1 %v1020_v12 }
  0x13   :  { %898 = vmatpush3.bf16.msra.mxu0 %v1005_v5  ;;  %929 = vmatprep.subr.bf16.mxu1 %v1021_v13 }
  0x14   :  { %899 = vmatprep.subr.bf16.mxu0 %v1006_v6 }
  0x16   :  { %930 = vmatpush3.bf16.msra.mxu1 %v1021_v13 }
  0x17   :  { %900 = vmatpush3.bf16.msra.mxu0 %v1006_v6  ;;  %931 = vmatprep.subr.bf16.mxu1 %v1022_v21 }
  0x18   :  { %901 = vmatprep.subr.bf16.mxu0 %v1007_v9 }
  0x1a   :  { %932 = vmatpush3.bf16.msra.mxu1 %v1022_v21 }
  0x1b   :  { %902 = vmatpush3.bf16.msra.mxu0 %v1007_v9  ;;  %933 = vmatprep.subr.bf16.mxu1 %v1023_v22 }
  0x1c   :  { %903 = vmatprep.subr.bf16.mxu0 %v1008_v11 }
  0x1e   :  { %934 = vmatpush3.bf16.msra.mxu1 %v1023_v22  ;;  %v1030_v22 = vld [vmem:[%s1211_s5 + $0x10] sm:$0xff]  }
  0x1f   :  { %904 = vmatpush3.bf16.msra.mxu0 %v1008_v11  ;;  %935 = vmatprep.subr.bf16.mxu1 %v1024_v23 }
  0x20   :  { %953 = vmatprep.subr.bf16.mxu0 %v1025_v24 }
  0x22   :  { %906 = vmatmul.mubr.bf16.vlgmr.msra.gmra.mxu0 %v1010_v14  ;;  %936 = vmatpush3.bf16.msra.mxu1 %v1024_v23  ;;  %v1031_v23 = vld [vmem:[%s1211_s5 + $0x8] sm:$0xff]  }
  0x23   :  { %909 = vmatprep.mubr.bf16.mxu0 %v1011_v15  ;;  %985 = vmatprep.subr.bf16.mxu1 %v1025_v24 }
  0x24   :  { %954 = vmatpush3.bf16.msra.mxu0 %v1025_v24 }
  0x25   :  { %955 = vmatprep.subr.bf16.mxu0 %v1026_v25 }
  0x28   :  { %956 = vmatpush3.bf16.msra.mxu0 %v1026_v25 }
  0x29   :  { %957 = vmatprep.subr.bf16.mxu0 %v1027_v26 }
  0x2a   :  { %910 = vmatmul.mubr.bf16.gmra.mxu0 %v1012_v16 }
  0x2b   :  { %913 = vmatprep.mubr.bf16.mxu0 %v1013_v17 }
  0x2c   :  { %958 = vmatpush3.bf16.msra.mxu0 %v1027_v26 }
  0x2d   :  { %959 = vmatprep.subr.bf16.mxu0 %v1028_v27 }
  0x30   :  { %960 = vmatpush3.bf16.msra.mxu0 %v1028_v27 }
  0x31   :  { %961 = vmatprep.subr.bf16.mxu0 %v1160_v28 }
  0x32   :  { %914 = vmatmul.mubr.bf16.gmra.mxu0 %v1014_v18 }
  0x33   :  { %917 = vmatprep.mubr.bf16.mxu0 %v1015_v19 }
  0x34   :  { %962 = vmatpush3.bf16.msra.mxu0 %v1160_v28 }
  0x35   :  { %963 = vmatprep.subr.bf16.mxu0 %v1030_v22 }
  0x38   :  { %964 = vmatpush3.bf16.msra.mxu0 %v1030_v22 }
  0x39   :  { %965 = vmatprep.subr.bf16.mxu0 %v1031_v23 }
  0x3a   :  { %918 = vmatmul.mubr.bf16.gmra.mxu0 %v1016_v20 }
  0x3c   :  { %966 = vmatpush3.bf16.msra.mxu0 %v1031_v23 }
  0xe2   :  { %v907_v29 = vpop.f32.mrf.mxu0 }
  0xe3   :  { %v205_v35 = vadd.f32 %v907_v29, %v727_v31 }
  0xe4   :  { %v196_v30 = vpop.f32.mrf.mxu0 }
  0xe5   :  { %v197_v33 = vadd.f32 %v727_v31, %v196_v30  ;;  %v261_v42 = vmax.f32 %v205_v35, 0.0 }
  0xe6   :  { %v908_v32 = vpop.f32.mrf.mxu0 }
  0xe7   :  { %v208_v34 = vadd.f32 %v908_v32, %v727_v31  ;;  %v259_v40 = vmax.f32 %v197_v33, 0.0 }
  0xe8   :  { %v199_v36 = vpop.f32.mrf.mxu0 }
  0xe9   :  { %v200_v37 = vadd.f32 %v727_v31, %v199_v36  ;;  %v262_v38 = vmax.f32 %v208_v34, 0.0 }
  0xea   :  { %v911_v39 = vpop.f32.mrf.mxu0 }
  0xeb   :  { %v260_v41 = vmax.f32 %v200_v37, 0.0  ;;  %v276_v45 = vpack.c.bf16 %v262_v38, %v261_v42  ;;  %v221_v49 = vadd.f32 %v911_v39, %v727_v31 }
  0xec   :  { %v212_v43 = vpop.f32.mrf.mxu0 }
  0xed   :  { %v275_v44 = vpack.c.bf16 %v260_v41, %v259_v40  ;;  %v213_v47 = vadd.f32 %v727_v31, %v212_v43  ;;  %v265_v56 = vmax.f32 %v221_v49, 0.0 }
  0xee   :  { %v912_v46 = vpop.f32.mrf.mxu0 }
  0xef   :  { %v224_v48 = vadd.f32 %v912_v46, %v727_v31  ;;  %937 = vmatprep.mubr.bf16.mxu1 %v275_v44  ;;  %v263_v54 = vmax.f32 %v213_v47, 0.0 }
  0xf0   :  { %v215_v50 = vpop.f32.mrf.mxu0  ;;  %938 = vmatmul.mubr.bf16.vlgmr.msra.gmra.mxu1 %v276_v45 }
  0xf1   :  { %v216_v51 = vadd.f32 %v727_v31, %v215_v50  ;;  %993 = vmatpush3.bf16.msra.mxu1 %v1025_v24  ;;  %v266_v52 = vmax.f32 %v224_v48, 0.0  ;;  %v1032_v24 = vld [vmem:[%s1211_s5] sm:$0xff]  }
  0xf2   :  { %v915_v53 = vpop.f32.mrf.mxu0  ;;  %986 = vmatprep.subr.bf16.mxu1 %v1026_v25  ;;  %967 = vmatprep.subr.bf16.mxu0 %v1032_v24 }
  0xf3   :  { %v264_v55 = vmax.f32 %v216_v51, 0.0  ;;  %v278_v59 = vpack.c.bf16 %v266_v52, %v265_v56  ;;  %v237_v63 = vadd.f32 %v915_v53, %v727_v31  ;;  %968 = vmatpush3.bf16.msra.mxu0 %v1032_v24 }
  0xf4   :  { %v228_v57 = vpop.f32.mrf.mxu0 }
  0xf5   :  { %v277_v58 = vpack.c.bf16 %v264_v55, %v263_v54  ;;  %994 = vmatpush3.bf16.msra.mxu1 %v1026_v25  ;;  %v229_v61 = vadd.f32 %v727_v31, %v228_v57  ;;  %v269_v6 = vmax.f32 %v237_v63, 0.0 }
  0xf6   :  { %v916_v60 = vpop.f32.mrf.mxu0  ;;  %987 = vmatprep.subr.bf16.mxu1 %v1027_v26 }
  0xf7   :  { %v240_v62 = vadd.f32 %v916_v60, %v727_v31  ;;  %941 = vmatprep.mubr.bf16.mxu1 %v277_v58  ;;  %v267_v4 = vmax.f32 %v229_v61, 0.0 }
  0xf8   :  { %v231_v0 = vpop.f32.mrf.mxu0  ;;  %942 = vmatmul.mubr.bf16.gmra.mxu1 %v278_v59 }
  0xf9   :  { %v232_v1 = vadd.f32 %v727_v31, %v231_v0  ;;  %995 = vmatpush3.bf16.msra.mxu1 %v1027_v26  ;;  %v270_v2 = vmax.f32 %v240_v62, 0.0 }
  0xfa   :  { %v919_v3 = vpop.f32.mrf.mxu0  ;;  %988 = vmatprep.subr.bf16.mxu1 %v1028_v27 }
  0xfb   :  { %v268_v5 = vmax.f32 %v232_v1, 0.0  ;;  %v280_v9 = vpack.c.bf16 %v270_v2, %v269_v6  ;;  %v253_v13 = vadd.f32 %v919_v3, %v727_v31 }
  0xfc   :  { %v244_v7 = vpop.f32.mrf.mxu0 }
  0xfd   :  { %v279_v8 = vpack.c.bf16 %v268_v5, %v267_v4  ;;  %996 = vmatpush3.bf16.msra.mxu1 %v1028_v27  ;;  %v245_v11 = vadd.f32 %v727_v31, %v244_v7  ;;  %v273_v19 = vmax.f32 %v253_v13, 0.0  ;;  %v744_v27 = vld [vmem:[%s1213_s4] ss:$0 sm:$0xff] }
  0xfe   :  { %v920_v10 = vpop.f32.mrf.mxu0  ;;  %989 = vmatprep.subr.bf16.mxu1 %v1160_v28 }
  0xff   :  { %v256_v12 = vadd.f32 %v920_v10, %v727_v31  ;;  %945 = vmatprep.mubr.bf16.mxu1 %v279_v8  ;;  %v271_v17 = vmax.f32 %v245_v11, 0.0 }
 0x100   :  { %v247_v14 = vpop.f32.mrf.mxu0  ;;  %946 = vmatmul.mubr.bf16.gmra.mxu1 %v280_v9 }
 0x101   :  { %v248_v15 = vadd.f32 %v727_v31, %v247_v14  ;;  %997 = vmatpush3.bf16.msra.mxu1 %v1160_v28  ;;  %v274_v16 = vmax.f32 %v256_v12, 0.0 }
 0x102   :  { %990 = vmatprep.subr.bf16.mxu1 %v1030_v22 }
 0x103   :  { %v272_v18 = vmax.f32 %v248_v15, 0.0  ;;  %v282_v21 = vpack.c.bf16 %v274_v16, %v273_v19  ;;  %v753_v19 = vld [vmem:[%s1214_s6] ss:$0 sm:$0xff] }
 0x105   :  { %v281_v20 = vpack.c.bf16 %v272_v18, %v271_v17  ;;  %998 = vmatpush3.bf16.msra.mxu1 %v1030_v22 }
 0x106   :  { %991 = vmatprep.subr.bf16.mxu1 %v1031_v23 }
 0x107   :  { %949 = vmatprep.mubr.bf16.mxu1 %v281_v20 }
 0x108   :  { %950 = vmatmul.mubr.bf16.gmra.mxu1 %v282_v21 }
 0x109   :  { %999 = vmatpush3.bf16.msra.mxu1 %v1031_v23 }
 0x10a   :  { %992 = vmatprep.subr.bf16.mxu1 %v1032_v24 }
 0x10d   :  { %1000 = vmatpush3.bf16.msra.mxu1 %v1032_v24 }
 0x1b0   :  { %v939_v25 = vpop.f32.mrf.mxu1 }
 0x1b1   :  { %v397_v31 = vadd.f32 %v939_v25, %v744_v27 }
 0x1b2   :  { %v388_v26 = vpop.f32.mrf.mxu1 }
 0x1b3   :  { %v389_v29 = vadd.f32 %v744_v27, %v388_v26  ;;  %v453_v38 = vmax.f32 %v397_v31, 0.0 }
 0x1b4   :  { %v940_v28 = vpop.f32.mrf.mxu1 }
 0x1b5   :  { %v400_v30 = vadd.f32 %v940_v28, %v744_v27  ;;  %v451_v36 = vmax.f32 %v389_v29, 0.0 }
 0x1b6   :  { %v391_v32 = vpop.f32.mrf.mxu1 }
 0x1b7   :  { %v392_v33 = vadd.f32 %v744_v27, %v391_v32  ;;  %v454_v34 = vmax.f32 %v400_v30, 0.0 }
 0x1b8   :  { %v943_v35 = vpop.f32.mrf.mxu1 }
 0x1b9   :  { %v452_v37 = vmax.f32 %v392_v33, 0.0  ;;  %v468_v41 = vpack.c.bf16 %v454_v34, %v453_v38  ;;  %v413_v45 = vadd.f32 %v943_v35, %v744_v27 }
 0x1ba   :  { %v404_v39 = vpop.f32.mrf.mxu1 }
 0x1bb   :  { %v467_v40 = vpack.c.bf16 %v452_v37, %v451_v36  ;;  %v405_v43 = vadd.f32 %v744_v27, %v404_v39  ;;  %v457_v52 = vmax.f32 %v413_v45, 0.0 }
 0x1bc   :  { %v944_v42 = vpop.f32.mrf.mxu1 }
 0x1bd   :  { %v416_v44 = vadd.f32 %v944_v42, %v744_v27  ;;  %969 = vmatprep.mubr.bf16.mxu0 %v467_v40  ;;  %v455_v50 = vmax.f32 %v405_v43, 0.0 }
 0x1be   :  { %v407_v46 = vpop.f32.mrf.mxu1  ;;  %970 = vmatmul.mubr.bf16.vlgmr.msra.gmra.mxu0 %v468_v41 }
 0x1bf   :  { %v408_v47 = vadd.f32 %v744_v27, %v407_v46  ;;  %v458_v48 = vmax.f32 %v416_v44, 0.0 }
 0x1c0   :  { %v947_v49 = vpop.f32.mrf.mxu1 }
 0x1c1   :  { %v456_v51 = vmax.f32 %v408_v47, 0.0  ;;  %v470_v55 = vpack.c.bf16 %v458_v48, %v457_v52  ;;  %v429_v59 = vadd.f32 %v947_v49, %v744_v27 }
 0x1c2   :  { %v420_v53 = vpop.f32.mrf.mxu1 }
 0x1c3   :  { %v469_v54 = vpack.c.bf16 %v456_v51, %v455_v50  ;;  %v421_v57 = vadd.f32 %v744_v27, %v420_v53  ;;  %v461_v2 = vmax.f32 %v429_v59, 0.0 }
 0x1c4   :  { %v948_v56 = vpop.f32.mrf.mxu1 }
 0x1c5   :  { %v432_v58 = vadd.f32 %v948_v56, %v744_v27  ;;  %973 = vmatprep.mubr.bf16.mxu0 %v469_v54  ;;  %v459_v0 = vmax.f32 %v421_v57, 0.0 }
 0x1c6   :  { %v423_v60 = vpop.f32.mrf.mxu1  ;;  %974 = vmatmul.mubr.bf16.gmra.mxu0 %v470_v55 }
 0x1c7   :  { %v424_v61 = vadd.f32 %v744_v27, %v423_v60  ;;  %v462_v62 = vmax.f32 %v432_v58, 0.0 }
 0x1c8   :  { %v951_v63 = vpop.f32.mrf.mxu1 }
 0x1c9   :  { %v460_v1 = vmax.f32 %v424_v61, 0.0  ;;  %v472_v5 = vpack.c.bf16 %v462_v62, %v461_v2  ;;  %v445_v9 = vadd.f32 %v951_v63, %v744_v27 }
 0x1ca   :  { %v436_v3 = vpop.f32.mrf.mxu1 }
 0x1cb   :  { %v471_v4 = vpack.c.bf16 %v460_v1, %v459_v0  ;;  %v437_v7 = vadd.f32 %v744_v27, %v436_v3  ;;  %v465_v15 = vmax.f32 %v445_v9, 0.0 }
 0x1cc   :  { %v952_v6 = vpop.f32.mrf.mxu1 }
 0x1cd   :  { %v448_v8 = vadd.f32 %v952_v6, %v744_v27  ;;  %977 = vmatprep.mubr.bf16.mxu1 %v471_v4  ;;  %v463_v13 = vmax.f32 %v437_v7, 0.0 }
 0x1ce   :  { %v439_v10 = vpop.f32.mrf.mxu1  ;;  %978 = vmatmul.mubr.bf16.vlgmr.msra.gmra.mxu1 %v472_v5 }
 0x1cf   :  { %v440_v11 = vadd.f32 %v744_v27, %v439_v10  ;;  %v466_v12 = vmax.f32 %v448_v8, 0.0 }
 0x1d1   :  { %v464_v14 = vmax.f32 %v440_v11, 0.0  ;;  %v474_v17 = vpack.c.bf16 %v466_v12, %v465_v15 }
 0x1d3   :  { %v473_v16 = vpack.c.bf16 %v464_v14, %v463_v13 }
 0x1d5   :  { %981 = vmatprep.mubr.bf16.mxu1 %v473_v16 }
 0x1d6   :  { %982 = vmatmul.mubr.bf16.gmra.mxu1 %v474_v17 }
 0x27e   :  { %v971_v18 = vpop.f32.mrf.mxu0 }
 0x27f   :  { %v589_v22 = vadd.f32 %v971_v18, %v753_v19 }
 0x280   :  { %v580_v20 = vpop.f32.mrf.mxu0 }
 0x281   :  { %v581_v25 = vadd.f32 %v753_v19, %v580_v20 }
 0x282   :  { %v972_v21 = vpop.f32.mrf.mxu0 }
 0x283   :  { %v592_v23 = vadd.f32 %v972_v21, %v753_v19 }
 0x284   :  { %v583_v24 = vpop.f32.mrf.mxu0 }
 0x285   :  { %v802_v26 = vpack.c.bf16 %v592_v23, %v589_v22  ;;  %v584_v27 = vadd.f32 %v753_v19, %v583_v24 }
 0x286   :  { %v975_v28 = vpop.f32.mrf.mxu0 }
 0x287   :  { %834 = vst [vmem:[%s1215_s7 + $0x8] sm:$0xff] %v802_v26   ;;  %v797_v29 = vpack.c.bf16 %v584_v27, %v581_v25  ;;  %v605_v32 = vadd.f32 %v975_v28, %v753_v19 }
 0x288   :  { %v596_v30 = vpop.f32.mrf.mxu0 }
 0x289   :  { %798 = vst [vmem:[%s1215_s7] sm:$0xff] %v797_v29   ;;  %v597_v35 = vadd.f32 %v753_v19, %v596_v30 }
 0x28a   :  { %v976_v31 = vpop.f32.mrf.mxu0 }
 0x28b   :  { %v608_v33 = vadd.f32 %v976_v31, %v753_v19 }
 0x28c   :  { %v599_v34 = vpop.f32.mrf.mxu0 }
 0x28d   :  { %v812_v36 = vpack.c.bf16 %v608_v33, %v605_v32  ;;  %v600_v37 = vadd.f32 %v753_v19, %v599_v34 }
 0x28e   :  { %v979_v38 = vpop.f32.mrf.mxu1 }
 0x28f   :  { %836 = vst [vmem:[%s1215_s7 + $0x18] sm:$0xff] %v812_v36   ;;  %v807_v39 = vpack.c.bf16 %v600_v37, %v597_v35  ;;  %v621_v42 = vadd.f32 %v979_v38, %v753_v19 }
 0x290   :  { %v612_v40 = vpop.f32.mrf.mxu1 }
 0x291   :  { %835 = vst [vmem:[%s1215_s7 + $0x10] sm:$0xff] %v807_v39   ;;  %v613_v45 = vadd.f32 %v753_v19, %v612_v40 }
 0x292   :  { %v980_v41 = vpop.f32.mrf.mxu1 }
 0x293   :  { %v624_v43 = vadd.f32 %v980_v41, %v753_v19 }
 0x294   :  { %v615_v44 = vpop.f32.mrf.mxu1 }
 0x295   :  { %v822_v46 = vpack.c.bf16 %v624_v43, %v621_v42  ;;  %v616_v47 = vadd.f32 %v753_v19, %v615_v44 }
 0x296   :  { %v983_v48 = vpop.f32.mrf.mxu1 }
 0x297   :  { %838 = vst [vmem:[%s1215_s7 + $0x28] sm:$0xff] %v822_v46   ;;  %v817_v49 = vpack.c.bf16 %v616_v47, %v613_v45  ;;  %v637_v52 = vadd.f32 %v983_v48, %v753_v19 }
 0x298   :  { %v628_v50 = vpop.f32.mrf.mxu1 }
 0x299   :  { %837 = vst [vmem:[%s1215_s7 + $0x20] sm:$0xff] %v817_v49   ;;  %v629_v55 = vadd.f32 %v753_v19, %v628_v50 }
 0x29a   :  { %v984_v51 = vpop.f32.mrf.mxu1 }
 0x29b   :  { %v640_v53 = vadd.f32 %v984_v51, %v753_v19 }
 0x29c   :  { %v631_v54 = vpop.f32.mrf.mxu1 }
 0x29d   :  { %v832_v56 = vpack.c.bf16 %v640_v53, %v637_v52  ;;  %v632_v57 = vadd.f32 %v753_v19, %v631_v54 }
 0x29f   :  { %840 = vst [vmem:[%s1215_s7 + $0x38] sm:$0xff] %v832_v56   ;;  %v827_v58 = vpack.c.bf16 %v632_v57, %v629_v55 }
 0x2a1   :  { %839 = vst [vmem:[%s1215_s7 + $0x30] sm:$0xff] %v827_v58  }

// kernel: appnp_forward.3
= control target key start
LH: loop header
LB: loop body
LE: loop exit
PB: predicated region body
PF: predicated region fallthrough
CT: control target
= control target key end

     0   :  { %s1073_s9 = smov 0   ;;  %s1075_s10 = smov 0   ;;  %s1277_s0 = inlined_call_operand.vmem [shape: bf16[128,128], index: 0, kind: input, shape index: {}]   ;;  %s1278_s1 = inlined_call_operand.vmem [shape: bf16[128,128], index: 1, kind: input, shape index: {}]   ;;  %s1279_s2 = inlined_call_operand.vmem [shape: f32[128,128], index: 2, kind: output, shape index: {}]  }
   0x1   :  { %s1077_s11 = smov 0  }
   0x2 LB: > { %s31_s12 = sadd.s32 1, %s1052_s10  ;;  %p782_p0 = scmp.ge.s32.totalorder %s1056_s11, 1  ;;  %s1056_s11 = sphi %s1077_s11, %s12_s11   ;;  %s1052_s10 = sphi %s1075_s10, %s1281_s10   ;;  %s1048_s9 = sphi %s1073_s9, %s1280_s9  }
   0x3   : > { %p33_p1 = scmp.ge.s32.totalorder %s31_s12, 10  ;;  %p132_p2 = scmp.lt.s32.totalorder %s1056_s11, 11 }
   0x5   : > { %s1283_s12 = smov (%p33_p1, %s31_s12), 0  ;;  %p133_p3 = pnand %p782_p0, %p132_p2 }
   0x6   : > { %p162_p4 = scmp.lt.s32.totalorder (!%p133_p3), %s1048_s9, 0  ;;  %s163_s13 = ssub.s32 (!%p133_p3), 0, %s1048_s9 }
   0x7   : > { %136 = sbr.rel (%p133_p3) target bundleno = 278 (0x116), region = 28  ;;  %s783_s14 = smin.u32 (!%p133_p3), %s1048_s9, %s163_s13 }
   0x8   : > { %p176_p5 = scmp.eq.s32.totalorder (!%p133_p3), %s1048_s9, 0  ;;  %s165_s15 = sand.u32 (!%p133_p3), 1, %s783_s14  }
   0x9   : > { %s166_s16 = ssub.s32 (!%p133_p3), 0, %s165_s15 }
   0xc   : > { %s1285_s16 = smov (!%p162_p4, %s166_s16), %s165_s15  ;;  %v185_v0 = vld [vmem:[%s1278_s1] sm:$0xff] (%p176_p5)   ;;  %v187_v1 = vld [vmem:[%s1278_s1 + $0x8] sm:$0xff] (%p176_p5)   ;;  %v189_v2 = vld [vmem:[%s1278_s1 + $0x10] sm:$0xff] (%p176_p5)  }
   0xd   : > { %p785_p6 = scmp.lt.s32.totalorder %s1285_s16, 0  ;;  %s172_s17 = sadd.s32 2, %s1285_s16  ;;  %201 = vst [vmem:[#allocation2] sm:$0xff] (%p176_p5), %v185_v0   ;;  %203 = vst [vmem:[#allocation2 + $0x8] sm:$0xff] (%p176_p5), %v187_v1   ;;  %v191_v3 = vld [vmem:[%s1278_s1 + $0x18] sm:$0xff] (%p176_p5)   ;;  %v193_v4 = vld [vmem:[%s1278_s1 + $0x20] sm:$0xff] (%p176_p5)  }
   0xe   : > { %184 = sbr.rel (!%p176_p5) target bundleno = 19 (0x13), region = 32  ;;  %205 = vst [vmem:[#allocation2 + $0x10] sm:$0xff] (%p176_p5), %v189_v2   ;;  %v195_v5 = vld [vmem:[%s1278_s1 + $0x28] sm:$0xff] (%p176_p5)   ;;  %207 = vst [vmem:[#allocation2 + $0x18] sm:$0xff] (%p176_p5), %v191_v3   ;;  %v197_v6 = vld [vmem:[%s1278_s1 + $0x30] sm:$0xff] (%p176_p5)  }
   0xf   : > { %s1287_s17 = smov (!%p785_p6, %s172_s17), %s1285_s16  ;;  %209 = vst [vmem:[#allocation2 + $0x20] sm:$0xff] (%p176_p5), %v193_v4   ;;  %211 = vst [vmem:[#allocation2 + $0x28] sm:$0xff] (%p176_p5), %v195_v5   ;;  %v199_v7 = vld [vmem:[%s1278_s1 + $0x38] sm:$0xff] (%p176_p5)  }
  0x10   : > { %s786_s18 = sshll.u32 %s1287_s17, 7  ;;  %213 = vst [vmem:[#allocation2 + $0x30] sm:$0xff] (%p176_p5), %v197_v6   ;;  %215 = vst [vmem:[#allocation2 + $0x38] sm:$0xff] (%p176_p5), %v199_v7  }
  0x11   : > { %s1097_s19 = ssub.s32 128, %s786_s18 }
  0x13 PF: > { %s238_s8 = sshra.s32 %s786_s18, 3  ;;  %v1026_v8 = vld [vmem:[%s1277_s0] sm:$0xff]   ;;  %v1028_v18 = vld [vmem:[%s1277_s0 + $0x8] sm:$0xff]   ;;  %v1030_v20 = vld [vmem:[%s1277_s0 + $0x10] sm:$0xff]   ;;  %s684_s23 = sshra.s32 %s1097_s19, 3 }
  0x14   : > { %s789_s15 = sshll.u32 %s238_s8, 2  ;;  %v1027_v9 = vld [vmem:[%s1277_s0 + $0x20] sm:$0xff]   ;;  %962 = vmatprep.mubr.bf16.mxu0 %v1026_v8  ;;  %v1029_v19 = vld [vmem:[%s1277_s0 + $0x28] sm:$0xff]   ;;  %v1031_v21 = vld [vmem:[%s1277_s0 + $0x30] sm:$0xff]   ;;  %s1191_s26 = sshll.u32 %s684_s23, 2 }
  0x15   : > { %s1129_s20 = scalar_lea.vmem [#allocation2], %s789_s15  ;;  %970 = vmatprep.mubr.bf16.mxu1 %v1027_v9  ;;  %v1032_v22 = vld [vmem:[%s1277_s0 + $0x18] sm:$0xff]   ;;  %v916_v24 = vld [vmem:[%s1278_s1 + $0x8] sm:$0xff]   ;;  %v845_v26 = vld [vmem:[%s1278_s1] sm:$0xff]   ;;  %s1206_s19 = scalar_lea.vmem [#allocation2], %s1191_s26 }
  0x16   : > { %v1033_v23 = vld [vmem:[%s1277_s0 + $0x38] sm:$0xff]   ;;  %v920_v25 = vld [vmem:[%s1278_s1 + $0x28] sm:$0xff]   ;;  %v919_v27 = vld [vmem:[%s1278_s1 + $0x20] sm:$0xff]   ;;  %v850_v28 = vunpack.c.l.bf16 %v916_v24  ;;  %v846_v30 = vunpack.c.l.bf16 %v845_v26  ;;  %v851_v33 = vunpack.c.h.bf16 %v916_v24  ;;  %v847_v35 = vunpack.c.h.bf16 %v845_v26  ;;  %p823_p7 = scmp.ne.s32.totalorder %s1048_s9, 9 }
  0x17   : > { %v1018_v10 = vld [vmem:[%s1129_s20 + $0x38] sm:$0xff]   ;;  %v1019_v11 = vld [vmem:[%s1129_s20 + $0x30] sm:$0xff]   ;;  %v1020_v12 = vld [vmem:[%s1129_s20 + $0x28] sm:$0xff]   ;;  %v866_v29 = vunpack.c.l.bf16 %v920_v25  ;;  %v862_v31 = vunpack.c.l.bf16 %v919_v27  ;;  %v867_v34 = vunpack.c.h.bf16 %v920_v25  ;;  %v863_v40 = vunpack.c.h.bf16 %v919_v27 }
  0x18   : > { %946 = vmatprep.subr.bf16.mxu0 %v1018_v10  ;;  %978 = vmatprep.subr.bf16.mxu1 %v1018_v10  ;;  %v1021_v13 = vld [vmem:[%s1129_s20 + $0x20] sm:$0xff]   ;;  %v1022_v14 = vld [vmem:[%s1129_s20 + $0x18] sm:$0xff]   ;;  %v1023_v15 = vld [vmem:[%s1129_s20 + $0x10] sm:$0xff]   ;;  %v589_v38 = vmul.f32 0.1, %v850_v28 }
  0x19   : > { %947 = vmatpush3.bf16.msra.mxu0 %v1018_v10  ;;  %986 = vmatpush3.bf16.msra.mxu1 %v1018_v10  ;;  %v1024_v16 = vld [vmem:[%s1129_s20 + $0x8] sm:$0xff]   ;;  %v1025_v17 = vld [vmem:[%s1129_s20] sm:$0xff]   ;;  %v1172_v32 = vld [vmem:[%s1278_s1 + $0x18] sm:$0xff]   ;;  %v597_v39 = vmul.f32 0.1, %v866_v29 }
  0x1a   : > { %948 = vmatprep.subr.bf16.mxu0 %v1019_v11  ;;  %979 = vmatprep.subr.bf16.mxu1 %v1019_v11  ;;  %v1177_v36 = vld [vmem:[%s1278_s1 + $0x38] sm:$0xff]   ;;  %v1182_v37 = vld [vmem:[%s1278_s1 + $0x10] sm:$0xff]   ;;  %v858_v41 = vunpack.c.l.bf16 %v1172_v32  ;;  %v587_v44 = vmul.f32 0.1, %v846_v30  ;;  %v595_v45 = vmul.f32 0.1, %v862_v31  ;;  %v859_v7 = vunpack.c.h.bf16 %v1172_v32 }
  0x1b   : > { %v874_v46 = vunpack.c.l.bf16 %v1177_v36  ;;  %v590_v47 = vmul.f32 0.1, %v851_v33  ;;  %v598_v48 = vmul.f32 0.1, %v867_v34  ;;  %v588_v49 = vmul.f32 0.1, %v847_v35 }
  0x1c   : > { %v854_v50 = vunpack.c.l.bf16 %v1182_v37  ;;  %v921_v55 = vld [vmem:[%s1278_s1 + $0x30] sm:$0xff]   ;;  %v596_v56 = vmul.f32 0.1, %v863_v40  ;;  %v593_v57 = vmul.f32 0.1, %v858_v41  ;;  %v875_v8 = vunpack.c.h.bf16 %v1177_v36 }
  0x1d   : > { %949 = vmatpush3.bf16.msra.mxu0 %v1019_v11  ;;  %987 = vmatpush3.bf16.msra.mxu1 %v1019_v11  ;;  %v601_v62 = vmul.f32 0.1, %v874_v46  ;;  %v870_v2 = vunpack.c.l.bf16 %v921_v55  ;;  %v594_v30 = vmul.f32 0.1, %v859_v7 }
  0x1e   : > { %950 = vmatprep.subr.bf16.mxu0 %v1020_v12  ;;  %980 = vmatprep.subr.bf16.mxu1 %v1020_v12  ;;  %v591_v1 = vmul.f32 0.1, %v854_v50  ;;  %v602_v31 = vmul.f32 0.1, %v875_v8 }
  0x1f   : > { %v599_v27 = vmul.f32 0.1, %v870_v2 }
  0x21   : > { %951 = vmatpush3.bf16.msra.mxu0 %v1020_v12  ;;  %988 = vmatpush3.bf16.msra.mxu1 %v1020_v12 }
  0x22   : > { %952 = vmatprep.subr.bf16.mxu0 %v1021_v13  ;;  %981 = vmatprep.subr.bf16.mxu1 %v1021_v13 }
  0x25   : > { %953 = vmatpush3.bf16.msra.mxu0 %v1021_v13  ;;  %989 = vmatpush3.bf16.msra.mxu1 %v1021_v13 }
  0x26   : > { %954 = vmatprep.subr.bf16.mxu0 %v1022_v14  ;;  %982 = vmatprep.subr.bf16.mxu1 %v1022_v14 }
  0x29   : > { %955 = vmatpush3.bf16.msra.mxu0 %v1022_v14  ;;  %990 = vmatpush3.bf16.msra.mxu1 %v1022_v14 }
  0x2a   : > { %956 = vmatprep.subr.bf16.mxu0 %v1023_v15  ;;  %983 = vmatprep.subr.bf16.mxu1 %v1023_v15 }
  0x2d   : > { %957 = vmatpush3.bf16.msra.mxu0 %v1023_v15  ;;  %991 = vmatpush3.bf16.msra.mxu1 %v1023_v15 }
  0x2e   : > { %958 = vmatprep.subr.bf16.mxu0 %v1024_v16  ;;  %984 = vmatprep.subr.bf16.mxu1 %v1024_v16 }
  0x31   : > { %959 = vmatpush3.bf16.msra.mxu0 %v1024_v16  ;;  %992 = vmatpush3.bf16.msra.mxu1 %v1024_v16 }
  0x32   : > { %960 = vmatprep.subr.bf16.mxu0 %v1025_v17  ;;  %985 = vmatprep.subr.bf16.mxu1 %v1025_v17 }
  0x35   : > { %961 = vmatpush3.bf16.msra.mxu0 %v1025_v17  ;;  %993 = vmatpush3.bf16.msra.mxu1 %v1025_v17  ;;  %v855_v17 = vunpack.c.h.bf16 %v1182_v37 }
  0x37   : > { %v592_v36 = vmul.f32 0.1, %v855_v17 }
  0x38   : > { %963 = vmatmul.mubr.bf16.vlgmr.msra.gmra.mxu0 %v1028_v18  ;;  %971 = vmatmul.mubr.bf16.vlgmr.msra.gmra.mxu1 %v1029_v19  ;;  %v871_v18 = vunpack.c.h.bf16 %v921_v55 }
  0x39   : > { %966 = vmatprep.mubr.bf16.mxu0 %v1030_v20  ;;  %974 = vmatprep.mubr.bf16.mxu1 %v1031_v21 }
  0x40   : > { %967 = vmatmul.mubr.bf16.gmra.mxu0 %v1032_v22  ;;  %975 = vmatmul.mubr.bf16.gmra.mxu1 %v1033_v23 }
  0xf8   : > { %v964_v42 = vpop.f32.mrf.mxu0  ;;  %v972_v43 = vpop.f32.mrf.mxu1 }
  0xf9   : > { %v573_v51 = vmul.f32 0.9, %v964_v42  ;;  %v581_v52 = vmul.f32 0.9, %v972_v43 }
  0xfa   : > { %v420_v53 = vpop.f32.mrf.mxu0  ;;  %v452_v54 = vpop.f32.mrf.mxu1 }
  0xfb   : > { %v571_v58 = vmul.f32 0.9, %v420_v53  ;;  %v579_v59 = vmul.f32 0.9, %v452_v54  ;;  %v1193_v3 = vadd.f32 %v589_v38, %v573_v51  ;;  %v1195_v4 = vadd.f32 %v597_v39, %v581_v52 }
  0xfc   : > { %v965_v60 = vpop.f32.mrf.mxu0  ;;  %v973_v61 = vpop.f32.mrf.mxu1  ;;  %v600_v39 = vmul.f32 0.1, %v871_v18 }
  0xfd   : > { %v574_v63 = vmul.f32 0.9, %v965_v60  ;;  %v582_v0 = vmul.f32 0.9, %v973_v61  ;;  %v603_v13 = vadd.f32 %v587_v44, %v571_v58  ;;  %v611_v14 = vadd.f32 %v595_v45, %v579_v59 }
  0xfe   : > { %v423_v5 = vpop.f32.mrf.mxu0  ;;  %v455_v6 = vpop.f32.mrf.mxu1 }
  0xff   : > { %v606_v9 = vadd.f32 %v590_v47, %v574_v63  ;;  %v1199_v10 = vadd.f32 %v598_v48, %v582_v0  ;;  %v572_v11 = vmul.f32 0.9, %v423_v5  ;;  %v580_v12 = vmul.f32 0.9, %v455_v6 }
 0x100   : > { %v968_v15 = vpop.f32.mrf.mxu0  ;;  %v976_v16 = vpop.f32.mrf.mxu1 }
 0x101   : > { %v884_v19 = vpack.c.bf16 %v606_v9, %v1193_v3  ;;  %v904_v20 = vpack.c.bf16 %v1199_v10, %v1195_v4  ;;  %v604_v21 = vadd.f32 %v588_v49, %v572_v11  ;;  %v612_v22 = vadd.f32 %v596_v56, %v580_v12 }
 0x102   : > { %v577_v23 = vmul.f32 0.9, %v968_v15  ;;  %v585_v24 = vmul.f32 0.9, %v976_v16  ;;  %v436_v25 = vpop.f32.mrf.mxu0  ;;  %v468_v26 = vpop.f32.mrf.mxu1 }
 0x103   : > { %923 = vst [vmem:[%s1206_s19 + $0x8] sm:$0xff] %v884_v19   ;;  %927 = vst [vmem:[%s1206_s19 + $0x28] sm:$0xff] %v904_v20   ;;  %v879_v28 = vpack.c.bf16 %v604_v21, %v603_v13  ;;  %v899_v29 = vpack.c.bf16 %v612_v22, %v611_v14  ;;  %v575_v32 = vmul.f32 0.9, %v436_v25  ;;  %v583_v33 = vmul.f32 0.9, %v468_v26 }
 0x104   : > { %v969_v34 = vpop.f32.mrf.mxu0  ;;  %v977_v35 = vpop.f32.mrf.mxu1  ;;  %v609_v40 = vadd.f32 %v593_v57, %v577_v23  ;;  %v617_v41 = vadd.f32 %v601_v62, %v585_v24 }
 0x105   : > { %880 = vst [vmem:[%s1206_s19] sm:$0xff] %v879_v28   ;;  %926 = vst [vmem:[%s1206_s19 + $0x20] sm:$0xff] %v899_v29   ;;  %v578_v37 = vmul.f32 0.9, %v969_v34  ;;  %v586_v38 = vmul.f32 0.9, %v977_v35  ;;  %v607_v48 = vadd.f32 %v591_v1, %v575_v32  ;;  %v615_v49 = vadd.f32 %v599_v27, %v583_v33 }
 0x106   : > { %v439_v42 = vpop.f32.mrf.mxu0  ;;  %v471_v43 = vpop.f32.mrf.mxu1 }
 0x107   : > { %v610_v44 = vadd.f32 %v594_v30, %v578_v37  ;;  %v618_v45 = vadd.f32 %v602_v31, %v586_v38  ;;  %v576_v46 = vmul.f32 0.9, %v439_v42  ;;  %v584_v47 = vmul.f32 0.9, %v471_v43 }
 0x109   : > { %v894_v50 = vpack.c.bf16 %v610_v44, %v609_v40  ;;  %v914_v51 = vpack.c.bf16 %v618_v45, %v617_v41  ;;  %v608_v52 = vadd.f32 %v592_v36, %v576_v46  ;;  %v616_v53 = vadd.f32 %v600_v39, %v584_v47  ;;  %707 = sbr.rel (%p823_p7) target bundleno = 278 (0x116), region = 44 }
 0x10b   : > { %925 = vst [vmem:[%s1206_s19 + $0x18] sm:$0xff] %v894_v50   ;;  %929 = vst [vmem:[%s1206_s19 + $0x38] sm:$0xff] %v914_v51   ;;  %v889_v54 = vpack.c.bf16 %v608_v52, %v607_v48  ;;  %v909_v55 = vpack.c.bf16 %v616_v53, %v615_v49 }
 0x10d   : > { %924 = vst [vmem:[%s1206_s19 + $0x10] sm:$0xff] %v889_v54   ;;  %928 = vst [vmem:[%s1206_s19 + $0x30] sm:$0xff] %v909_v55  }
 0x10e   : > { %709 = vst [vmem:[%s1279_s2] sm:$0xff] %v603_v13  ;;  %710 = vst [vmem:[%s1279_s2 + $0x8] sm:$0xff] %v604_v21 }
 0x10f   : > { %711 = vst [vmem:[%s1279_s2 + $0x10] sm:$0xff] %v1193_v3  ;;  %712 = vst [vmem:[%s1279_s2 + $0x18] sm:$0xff] %v606_v9 }
 0x110   : > { %713 = vst [vmem:[%s1279_s2 + $0x20] sm:$0xff] %v607_v48  ;;  %714 = vst [vmem:[%s1279_s2 + $0x28] sm:$0xff] %v608_v52 }
 0x111   : > { %715 = vst [vmem:[%s1279_s2 + $0x30] sm:$0xff] %v609_v40  ;;  %716 = vst [vmem:[%s1279_s2 + $0x38] sm:$0xff] %v610_v44 }
 0x112   : > { %717 = vst [vmem:[%s1279_s2 + $0x40] sm:$0xff] %v611_v14  ;;  %718 = vst [vmem:[%s1279_s2 + $0x48] sm:$0xff] %v612_v22 }
 0x113   : > { %719 = vst [vmem:[%s1279_s2 + $0x50] sm:$0xff] %v1195_v4  ;;  %720 = vst [vmem:[%s1279_s2 + $0x58] sm:$0xff] %v1199_v10 }
 0x114   : > { %721 = vst [vmem:[%s1279_s2 + $0x60] sm:$0xff] %v615_v49  ;;  %722 = vst [vmem:[%s1279_s2 + $0x68] sm:$0xff] %v616_v53 }
 0x115   : > { %723 = vst [vmem:[%s1279_s2 + $0x70] sm:$0xff] %v617_v41  ;;  %724 = vst [vmem:[%s1279_s2 + $0x78] sm:$0xff] %v618_v45 }
 0x116 PF: > { %s12_s11 = sadd.s32 1, %s1056_s11   ;;  %s1280_s9 = smov %s1052_s10 }
 0x117   : > { %p9_p8 = scmp.ge.s32.totalorder %s12_s11, 12   ;;  %s1281_s10 = smov %s1283_s12 }
 0x119   :  { %11 = sbr.rel (!%p9_p8) target bundleno = 2 (0x2), region = 74 }

</bundles_post_ra>
